<compile_context>
chip_gen: v7x
topology: tpu7x:2x2x1
jax: 0.10.0
libtpu: 0.0.40
codegen_flags: <defaults>
</compile_context>

<pallas_src>
import functools
import math

import jax
import jax.numpy as jnp
from jax.experimental import pallas as pl
from jax.experimental.pallas import tpu as pltpu


D_MODEL = 32
MAX_LEN = 64
DROPOUT_P = 0.1


def make_encoding(max_len: int, d_model: int, dtype=jnp.float32):
    """Deterministic sinusoidal positional-encoding buffer (matches the PyTorch buffer)."""
    position = jnp.arange(max_len, dtype=jnp.float32)[:, None]                  # (max_len, 1)
    div_term = jnp.exp(jnp.arange(0, d_model, 2, dtype=jnp.float32)
                       * -(math.log(10000.0) / d_model))                        # (d_model/2,)
    enc = jnp.zeros((max_len, d_model), dtype=jnp.float32)
    enc = enc.at[:, 0::2].set(jnp.sin(position * div_term))
    enc = enc.at[:, 1::2].set(jnp.cos(position * div_term))
    return enc[None].astype(dtype)                                              # (1, max_len, d_model)


def _pe_dropout_kernel(x_ref, pe_ref, u_ref, o_ref, *, keep_prob: float):
    """Single-step elementwise hot path over the whole lane-dense (B, S*D) slab."""
    y = x_ref[...] + pe_ref[...]                       # (B, S*D) + (1, S*D) broadcast add
    keep = u_ref[...] < jnp.float32(keep_prob)         # inverted dropout: keep w.p. keep_prob
    scale = jnp.asarray(1.0 / keep_prob, dtype=y.dtype)
    o_ref[...] = jnp.where(keep, y * scale, jnp.zeros((), y.dtype)).astype(o_ref.dtype)


def positional_encoding_forward(x, encoding, *, key=None, p: float = DROPOUT_P,
                                training: bool = True):
    """x: (B, S, D); encoding: (1, max_len, D). Returns dropout(x + encoding[:, :S])."""
    B, S, D = x.shape
    p_eff = float(p) if training else 0.0

    if p_eff <= 0.0:
        # Eval path: trivial broadcast-add — let XLA fuse it, no custom-call boundary.
        return x + encoding[:, :S, :]

    keep_prob = 1.0 - p_eff
    SD = S * D
    max_len = encoding.shape[1]

    # Lane-dense views (row-major reshapes are metadata-only).
    x2 = x.reshape(B, SD)
    pe_flat = encoding.reshape(1, max_len * D)          # first S*D entries == encoding[:, :S, :]
    u = jax.random.uniform(key, (B, SD), dtype=jnp.float32)

    kernel = functools.partial(_pe_dropout_kernel, keep_prob=keep_prob)

    out2 = pl.pallas_call(
        kernel,
        out_shape=jax.ShapeDtypeStruct((B, SD), x.dtype),
        grid=(1,),                                      # single step: one DMA in, one mask, one DMA out
        in_specs=[
            pl.BlockSpec((B, SD), lambda i: (0, 0)),    # x slab, resident for the whole call
            pl.BlockSpec((1, SD), lambda i: (0, 0)),    # PE window = first S*D of flattened buffer
            pl.BlockSpec((B, SD), lambda i: (0, 0)),    # dropout uniforms
        ],
        out_specs=pl.BlockSpec((B, SD), lambda i: (0, 0)),
        compiler_params=pltpu.CompilerParams(
            dimension_semantics=("arbitrary",),
        ),
    )(x2, pe_flat, u)

    return out2.reshape(B, S, D)


if __name__ == "__main__":
    key = jax.random.PRNGKey(0)
    kx, kdrop = jax.random.split(key)

    B, S = 2, 8
    x = jax.random.normal(kx, (B, S, D_MODEL), dtype=jnp.float32)
    encoding = make_encoding(MAX_LEN, D_MODEL)

    # Training-mode forward (dropout applied inside the Pallas kernel).
    out_train = positional_encoding_forward(x, encoding, key=kdrop, p=DROPOUT_P, training=True)
    jax.block_until_ready(out_train)
    assert out_train.shape == (B, S, D_MODEL)

    # Plain-JAX reference using the exact same uniforms / inverted-dropout rule.
    keep_prob = 1.0 - DROPOUT_P
    u_ref = jax.random.uniform(kdrop, (B, S * D_MODEL), dtype=jnp.float32).reshape(B, S, D_MODEL)
    ref_train = jnp.where(u_ref < keep_prob,
                          (x + encoding[:, :S, :]) / keep_prob,
                          jnp.float32(0.0))
    assert jnp.allclose(out_train, ref_train, atol=1e-6), "train path mismatch"

    # Eval-mode forward (p=0 → plain broadcast-add path).
    out_eval = positional_encoding_forward(x, encoding, training=False)
    jax.block_until_ready(out_eval)
    assert jnp.allclose(out_eval, x + encoding[:, :S, :], atol=1e-6), "eval path mismatch"

    print("KERNEL_OK")
</pallas_src>

<mosaic_0001>
module attributes {stable_mosaic.version = 11 : i64} {
  func.func @_pe_dropout_kernel(%arg0: i32, %arg1: memref<2x256xf32, #tpu.memory_space<vmem>>, %arg2: memref<1x256xf32, #tpu.memory_space<vmem>>, %arg3: memref<2x256xf32, #tpu.memory_space<vmem>>, %arg4: memref<2x256xf32, #tpu.memory_space<vmem>>) attributes {dimension_semantics = [#tpu.dimension_semantics<arbitrary>], iteration_bounds = array<i64: 1>, scalar_prefetch = 0 : i64, scratch_operands = 0 : i64, tpu.core_type = #tpu.core_type<tc>, window_params = [{pipeline_mode = #tpu.pipeline_mode<synchronous>, transform_indices = @transform_0, window_bounds = array<i64: 2, 256>}, {transform_indices = @transform_1, window_bounds = array<i64: 1, 256>}, {pipeline_mode = #tpu.pipeline_mode<synchronous>, transform_indices = @transform_2, window_bounds = array<i64: 2, 256>}, {pipeline_mode = #tpu.pipeline_mode<synchronous>, transform_indices = @transform_3, window_bounds = array<i64: 2, 256>}]} {
    %c0 = arith.constant 0 : index
    %c0_0 = arith.constant 0 : index
    %0 = vector.load %arg1[%c0, %c0_0] : memref<2x256xf32, #tpu.memory_space<vmem>>, vector<2x256xf32>
    %c0_1 = arith.constant 0 : index
    %c0_2 = arith.constant 0 : index
    %1 = vector.load %arg2[%c0_1, %c0_2] : memref<1x256xf32, #tpu.memory_space<vmem>>, vector<1x256xf32>
    %2 = vector.broadcast %1 : vector<1x256xf32> to vector<2x256xf32>
    %3 = arith.addf %0, %2 : vector<2x256xf32>
    %c0_3 = arith.constant 0 : index
    %c0_4 = arith.constant 0 : index
    %4 = vector.load %arg3[%c0_3, %c0_4] : memref<2x256xf32, #tpu.memory_space<vmem>>, vector<2x256xf32>
    %cst = arith.constant 0.899999976 : f32
    %5 = vector.broadcast %cst : f32 to vector<2x256xf32>
    %6 = arith.cmpf olt, %4, %5 : vector<2x256xf32>
    %cst_5 = arith.constant 1.11111116 : f32
    %7 = vector.broadcast %cst_5 : f32 to vector<2x256xf32>
    %8 = arith.mulf %3, %7 : vector<2x256xf32>
    %cst_6 = arith.constant 0.000000e+00 : f32
    %9 = vector.broadcast %cst_6 : f32 to vector<2x256xf32>
    %10 = arith.select %6, %8, %9 : vector<2x256xi1>, vector<2x256xf32>
    %c0_7 = arith.constant 0 : index
    %c0_8 = arith.constant 0 : index
    %11 = vector.load %arg4[%c0_7, %c0_8] : memref<2x256xf32, #tpu.memory_space<vmem>>, vector<2x256xf32>
    tpu.vector_store %arg4[%c0_7, %c0_8], %10 {strides = array<i32>} : memref<2x256xf32, #tpu.memory_space<vmem>>, vector<2x256xf32>,
    return
  }
  func.func @transform_0(%arg0: i32) -> (i32, i32) {
    %c0_i32 = arith.constant 0 : i32
    %c0_i32_0 = arith.constant 0 : i32
    %c0_i32_1 = arith.constant 0 : i32
    return %c0_i32, %c0_i32_0 : i32, i32
  }
  func.func @transform_1(%arg0: i32) -> (i32, i32) {
    %c0_i32 = arith.constant 0 : i32
    %c0_i32_0 = arith.constant 0 : i32
    %c0_i32_1 = arith.constant 0 : i32
    return %c0_i32, %c0_i32_0 : i32, i32
  }
  func.func @transform_2(%arg0: i32) -> (i32, i32) {
    %c0_i32 = arith.constant 0 : i32
    %c0_i32_0 = arith.constant 0 : i32
    %c0_i32_1 = arith.constant 0 : i32
    return %c0_i32, %c0_i32_0 : i32, i32
  }
  func.func @transform_3(%arg0: i32) -> (i32, i32) {
    %c0_i32 = arith.constant 0 : i32
    %c0_i32_0 = arith.constant 0 : i32
    %c0_i32_1 = arith.constant 0 : i32
    return %c0_i32, %c0_i32_0 : i32, i32
  }
}

</mosaic_0001>

<bundles_post_ra>
// kernel: tpu_custom_call.1
= control target key start
LH: loop header
LB: loop body
LE: loop exit
PB: predicated region body
PF: predicated region fallthrough
CT: control target
= control target key end

     0   :  { %8 = vsyncpa [#allocation3], 0  ;;  %s230_s0 = inlined_call_operand.hbm [shape: f32[2,256], index: 0, kind: input, shape index: {}]   ;;  %s231_s1 = inlined_call_operand.hbm [shape: f32[1,2048], index: 1, kind: input, shape index: {}]   ;;  %s232_s2 = inlined_call_operand.vmem [shape: f32[2,256], index: 2, kind: input, shape index: {}]   ;;  %s233_s3 = inlined_call_operand.hbm [shape: f32[2,256], index: 3, kind: output, shape index: {}]  }
   0x1   :  { %9 = vsyncpa [#allocation6], 0 }
   0x2   :  { %10 = vsyncpa [#allocation4], 0  ;;  %s157_s12 = smov [#allocation2]   ;;  %s158_s14 = smov [#allocation5]  }
   0x3   :  { %s17_s13 = sshll.u32 %s157_s12, 4  ;;  %s27_s15 = sshll.u32 %s158_s14, 4  ;;  %s18_s13 = int_to_ptr.vmem [resolvable:$true] %s17_s13  ;;  %s181_s15 = int_to_ptr.vmem [resolvable:$true] %s27_s15 }
   0x4   :  { %s85_s18 = scalar_lea.hbm %s230_s0, 64 }
   0x5   :  { %p86_p0 = scmp.ne.s32.totalorder %s230_s0, %s85_s18  ;;  %p89_p1 = scmp.lt.u32.totalorder %s85_s18, %s230_s0 }
   0x7   :  { %p91_p2 = pnand %p89_p1, %p86_p0 }
   0x9   :  { %94 = shalt.err (!%p91_p2)
}
   0xa   :  { %s95_s23 = scalar_lea.vmem %s18_s13, 64  ;;  %p100_p4 = scmp.lt.s32.totalorder %s18_s13, %s18_s13 }
   0xb   :  { %p96_p3 = scmp.ne.s32.totalorder %s18_s13, %s95_s23  ;;  %p101_p5 = scmp.lt.s32.totalorder %s95_s23, %s95_s23 }
   0xd   :  { %p102_p6 = por %p101_p5, %p100_p4 }
   0xf   :  { %p103_p7 = pnand %p102_p6, %p96_p3 }
  0x11   :  { %106 = shalt.err (!%p103_p7)
}
  0x12   :  { %20 = dma.hbm_to_vmem [thread:$0]  %s230_s0, 64, %s18_s13, [#allocation3]  }
  0x13   :  { %s107_s28 = scalar_lea.hbm %s231_s1, 32  ;;  %s109_s6 = scalar_lea.hbm %s231_s1, 256 }
  0x14   :  { %p108_p8 = scmp.ne.s32.totalorder %s231_s1, %s107_s28  ;;  %p110_p9 = scmp.lt.u32.totalorder %s109_s6, %s107_s28 }
  0x15   :  { %p111_p10 = scmp.lt.u32.totalorder %s107_s28, %s231_s1 }
  0x17   :  { %p112_p11 = por %p111_p10, %p110_p9 }
  0x19   :  { %p113_p12 = pnand %p112_p11, %p108_p8 }
  0x1b   :  { %116 = shalt.err (!%p113_p12)
}
  0x1c   :  { %s117_s0 = scalar_lea.vmem %s181_s15, 32  ;;  %p122_p0 = scmp.lt.s32.totalorder %s181_s15, %s181_s15 }
  0x1d   :  { %p118_p13 = scmp.ne.s32.totalorder %s181_s15, %s117_s0  ;;  %p123_p1 = scmp.lt.s32.totalorder %s117_s0, %s117_s0 }
  0x1f   :  { %p124_p2 = por %p123_p1, %p122_p0 }
  0x21   :  { %p125_p3 = pnand %p124_p2, %p118_p13 }
  0x23   :  { %128 = shalt.err (!%p125_p3)
}
  0x24   :  { %30 = dma.hbm_to_vmem [thread:$0]  %s231_s1, 32, %s181_s15, [#allocation6]  }
  0x25   :  { %151 = dma.done.wait [#allocation3], 64  }
  0x26   :  { %152 = vsyncadd [#allocation3], 4294967232 }
  0x27   :  { %153 = dma.done.wait [#allocation6], 32  }
  0x28   :  { %154 = vsyncadd [#allocation6], 4294967264  ;;  %v42_v0 = vlaneseq  ;;  %v159_v1 = vmov 1983009808   ;;  %v40_v7 = vld [vmem:[#allocation5] sm:$0x3] }
  0x29   :  { %v52_v2 = vunpack.c.l.s4 %v159_v1  ;;  %v39_v12 = vld [vmem:[#allocation2] sm:$0xf]  ;;  %s160_s12 = smov [#allocation7]  }
  0x2a   :  { %v43_v3 = vshrl.u32 %v42_v0, 7  ;;  %v60_v14 = vld [vmem:[%s232_s2] sm:$0xf]  ;;  %s71_s13 = sshll.u32 %s160_s12, 4  ;;  %s72_s13 = int_to_ptr.vmem [resolvable:$true] %s71_s13 }
  0x2b   :  { %v53_v6 = vunpack.c.0.s8 %v52_v2  ;;  %vm61_vm0 = vcmp.lt.f32.partialorder %v60_v14, 0.9  ;;  %s129_s14 = scalar_lea.vmem %s72_s13, 64  ;;  %p134_p5 = scmp.lt.s32.totalorder %s72_s13, %s72_s13 }
  0x2c   :  { %v44_v4 = vsub.s32 0, %v43_v3  ;;  %v48_v5 = vsub.s32 1, %v43_v3  ;;  %p130_p4 = scmp.ne.s32.totalorder %s72_s13, %s129_s14  ;;  %p135_p6 = scmp.lt.s32.totalorder %s129_s14, %s129_s14 }
  0x2d   :  { %v56_v10 = vsub.s32 %v53_v6, %v43_v3 }
  0x2e   :  { %v45_v8 = vrot.slane %v40_v7, %v44_v4  ;;  %v49_v9 = vrot.slane %v40_v7, %v48_v5  ;;  %p136_p7 = por %p135_p6, %p134_p5 }
  0x30   :  { %v50_v11 = vcombine.low %v45_v8, %v49_v9  ;;  %p137_p8 = pnand %p136_p7, %p130_p4 }
  0x32   :  { %v57_v13 = vrot.slane %v50_v11, %v56_v10 }
  0x34   :  { %v59_v15 = vadd.f32 %v57_v13, %v39_v12 }
  0x36   :  { %v62_v16 = vmul.f32 1.1111112, %v59_v15 }
  0x38   :  { %v63_v17 = vsel %vm61_vm0, %v62_v16, 0.0 }
  0x39   :  { %64 = vst [vmem:[#allocation7] sm:$0xf] %v63_v17 }
  0x3a   :  { %140 = shalt.err (!%p137_p8)
}
  0x3b   :  { %s141_s17 = scalar_lea.hbm %s233_s3, 64 }
  0x3c   :  { %p142_p9 = scmp.ne.s32.totalorder %s233_s3, %s141_s17  ;;  %p145_p10 = scmp.lt.u32.totalorder %s141_s17, %s233_s3 }
  0x3e   :  { %p147_p11 = pnand %p145_p10, %p142_p9 }
  0x40   :  { %150 = shalt.err (!%p147_p11)
}
  0x41   :  { %74 = dma.vmem_to_hbm [thread:$0]  %s72_s13, 64, %s233_s3, [#allocation4]  }
  0x42   :  { %155 = dma.done.wait [#allocation4], 64  }
  0x43   :  { %156 = vsyncadd [#allocation4], 4294967232 }
  0x44   :  { %78 = vsyncpa [#allocation3], 1 }
  0x45   :  { %79 = vsyncpa [#allocation6], 1 }
  0x46   :  { %80 = vsyncpa [#allocation4], 1 }

</bundles_post_ra>
